<compile_context>
chip_gen: v7x
topology: tpu7x:2x2x1
jax: 0.10.0
libtpu: 0.0.40
codegen_flags: <defaults>
</compile_context>

<pallas_src>
import functools

import jax
import jax.numpy as jnp
from jax.experimental import pallas as pl
from jax.experimental.pallas import tpu as pltpu


def _fused_linear_kernel(x_ref, w_ref, b_ref, out_ref):
    # x_ref: (tb, in_dim); w_ref: (in_dim, out_dim); b_ref: (1, out_dim) f32;
    # out_ref: (tb, out_dim).  One MXU matmul, bias added in f32, single cast out.
    acc = jnp.dot(x_ref[...], w_ref[...], preferred_element_type=jnp.float32)
    out_ref[...] = (acc + b_ref[...]).astype(out_ref.dtype)


def fold_fvc_params(w1, b1, w2, b2, *, weight_dtype=jnp.float32):
    """Fold the two linears into one (do this ONCE at parameter-init time).

    PyTorch nn.Linear layout: w1 (64, in_dim), b1 (64,), w2 (out_dim, 64), b2 (out_dim,).
    (x @ W1^T + b1) @ W2^T + b2 == x @ (W1^T @ W2^T) + (b1 @ W2^T + b2)
    """
    w_fused = jnp.dot(w1.T, w2.T, preferred_element_type=jnp.float32)           # (in, out)
    b_fused = jnp.dot(b1, w2.T, preferred_element_type=jnp.float32) + b2        # (out,)
    return (w_fused.astype(weight_dtype),
            b_fused.reshape(1, -1).astype(jnp.float32))                         # bias stays f32


def _choose_batch_tile(B, batch_tile):
    """Pick a sublane-aligned batch tile; keep the tile count even for v7x's 2 TCs."""
    b8 = max(8, ((B + 7) // 8) * 8)  # batch rounded up to a multiple of 8 sublanes
    if b8 <= batch_tile:
        # Whole batch fits in one tile.  For large batches split into two even tiles so
        # both v7x TensorCores get work; tiny batches stay single-tile (lowest overhead).
        if b8 >= 4096:
            return ((b8 // 2 + 7) // 8) * 8
        return b8
    # Multiple tiles: use an even tile count so the parallel batch axis splits evenly.
    n_tiles = pl.cdiv(b8, batch_tile)
    if n_tiles % 2:
        n_tiles += 1
    return ((pl.cdiv(b8, n_tiles) + 7) // 8) * 8


def _vmem_cap_bytes():
    """Generation-aware scoped-VMEM cap (physical capacity minus headroom, max 96 MiB)."""
    try:
        phys = int(getattr(pltpu.get_tpu_info(), "vmem_capacity_bytes", 128 << 20))
    except Exception:
        phys = 128 << 20
    return max(4 << 20, min(96 << 20, phys - (16 << 20)))


@functools.partial(jax.jit, static_argnames=("batch_tile",))
def fvc_transformer_forward(fvc, w_fused, b_fused, batch_tile=16384):
    """Forward pass of FVCTransformer given pre-folded parameters.

    fvc: (B, in_dim); w_fused: (in_dim, out_dim); b_fused: (1, out_dim) float32.
    """
    B, in_dim = fvc.shape
    out_dim = w_fused.shape[1]

    tb = _choose_batch_tile(B, batch_tile)
    grid = (pl.cdiv(B, tb),)

    itemsize_x = jnp.dtype(fvc.dtype).itemsize
    itemsize_w = jnp.dtype(w_fused.dtype).itemsize

    # Double-buffered x/out tiles + resident fused weight + f32 bias, with 2x headroom.
    need = (2 * tb * (in_dim + out_dim) * itemsize_x
            + in_dim * out_dim * itemsize_w + out_dim * 4)
    vmem_limit = int(min(max(2 * need, 4 << 20), _vmem_cap_bytes()))

    cost = pl.CostEstimate(
        flops=2 * B * in_dim * out_dim,
        transcendentals=0,
        bytes_accessed=(B * (in_dim + out_dim) * itemsize_x
                        + in_dim * out_dim * itemsize_w + out_dim * 4),
    )

    return pl.pallas_call(
        _fused_linear_kernel,
        out_shape=jax.ShapeDtypeStruct((B, out_dim), fvc.dtype),
        grid_spec=pltpu.PrefetchScalarGridSpec(
            num_scalar_prefetch=0,
            grid=grid,
            in_specs=[
                pl.BlockSpec((tb, in_dim), lambda i: (i, 0)),        # x: streamed over batch
                pl.BlockSpec((in_dim, out_dim), lambda i: (0, 0)),   # fused weight, VMEM-resident
                pl.BlockSpec((1, out_dim), lambda i: (0, 0)),        # fused bias, f32, VMEM-resident
            ],
            # No lane padding: block last dim equals the full array dim (legal), so the
            # kernel writes exactly B*out_dim elements back to HBM.
            out_specs=pl.BlockSpec((tb, out_dim), lambda i: (i, 0)),
        ),
        compiler_params=pltpu.CompilerParams(
            dimension_semantics=("parallel",),   # v7x: shard the batch grid across its 2 TCs
            vmem_limit_bytes=vmem_limit,
        ),
        cost_estimate=cost,
    )(fvc, w_fused, b_fused)


if __name__ == "__main__":
    # Small shapes consistent with the module: fvc_input_dim=32, output_dim=16, batch=8.
    B, fvc_input_dim, hidden, output_dim = 8, 32, 64, 16

    key = jax.random.PRNGKey(0)
    k_x, k_w1, k_b1, k_w2, k_b2 = jax.random.split(key, 5)

    fvc = jax.random.normal(k_x, (B, fvc_input_dim), dtype=jnp.float32)

    # PyTorch nn.Linear parameter layout: weight (out, in), bias (out,).
    w1 = jax.random.uniform(k_w1, (hidden, fvc_input_dim), dtype=jnp.float32,
                            minval=-1.0 / fvc_input_dim ** 0.5,
                            maxval=1.0 / fvc_input_dim ** 0.5)
    b1 = jax.random.uniform(k_b1, (hidden,), dtype=jnp.float32,
                            minval=-1.0 / fvc_input_dim ** 0.5,
                            maxval=1.0 / fvc_input_dim ** 0.5)
    w2 = jax.random.uniform(k_w2, (output_dim, hidden), dtype=jnp.float32,
                            minval=-1.0 / hidden ** 0.5,
                            maxval=1.0 / hidden ** 0.5)
    b2 = jax.random.uniform(k_b2, (output_dim,), dtype=jnp.float32,
                            minval=-1.0 / hidden ** 0.5,
                            maxval=1.0 / hidden ** 0.5)

    # Init-time fold (done once; not part of the per-call forward).
    w_fused, b_fused = fold_fvc_params(w1, b1, w2, b2)

    out = fvc_transformer_forward(fvc, w_fused, b_fused)
    out = jax.block_until_ready(out)

    # Reference: exact two-layer math as in the PyTorch forward.
    ref = (fvc @ w1.T + b1) @ w2.T + b2
    assert out.shape == (B, output_dim)
    # Folded single-matmul rounds slightly differently from two sequential f32 matmuls.
    assert jnp.allclose(out, ref, atol=1e-4, rtol=1e-4), float(jnp.max(jnp.abs(out - ref)))

    print("KERNEL_OK")
</pallas_src>

<mosaic_0001>
module attributes {stable_mosaic.version = 11 : i64} {
  func.func @_fused_linear_kernel(%arg0: i32, %arg1: memref<8x32xf32, #tpu.memory_space<vmem>>, %arg2: memref<32x16xf32, #tpu.memory_space<vmem>>, %arg3: memref<1x16xf32, #tpu.memory_space<vmem>>, %arg4: memref<8x16xf32, #tpu.memory_space<vmem>>) attributes {dimension_semantics = [#tpu.dimension_semantics<parallel>], iteration_bounds = array<i64: 1>, scalar_prefetch = 0 : i64, scratch_operands = 0 : i64, tpu.core_type = #tpu.core_type<tc>, window_params = [{transform_indices = @transform_0, window_bounds = array<i64: 8, 32>}, {pipeline_mode = #tpu.pipeline_mode<synchronous>, transform_indices = @transform_1, window_bounds = array<i64: 32, 16>}, {pipeline_mode = #tpu.pipeline_mode<synchronous>, transform_indices = @transform_2, window_bounds = array<i64: 1, 16>}, {transform_indices = @transform_3, window_bounds = array<i64: 8, 16>}]} {
    %c0 = arith.constant 0 : index
    %c0_0 = arith.constant 0 : index
    %0 = vector.load %arg1[%c0, %c0_0] : memref<8x32xf32, #tpu.memory_space<vmem>>, vector<8x32xf32>
    %c0_1 = arith.constant 0 : index
    %c0_2 = arith.constant 0 : index
    %1 = vector.load %arg2[%c0_1, %c0_2] : memref<32x16xf32, #tpu.memory_space<vmem>>, vector<32x16xf32>
    %cst = arith.constant dense<0.000000e+00> : vector<8x16xf32>
    %2 = tpu.matmul %0, %1, %cst {dimension_numbers = #tpu.dot_dimension_numbers<[1], [0], [0], [1], [0, 0, 1, 1], [], []>} : vector<8x32xf32>, vector<32x16xf32>, vector<8x16xf32> -> vector<8x16xf32>
    %c0_3 = arith.constant 0 : index
    %c0_4 = arith.constant 0 : index
    %3 = vector.load %arg3[%c0_3, %c0_4] : memref<1x16xf32, #tpu.memory_space<vmem>>, vector<1x16xf32>
    %4 = vector.broadcast %3 : vector<1x16xf32> to vector<8x16xf32>
    %5 = arith.addf %2, %4 : vector<8x16xf32>
    %c0_5 = arith.constant 0 : index
    %c0_6 = arith.constant 0 : index
    %6 = vector.load %arg4[%c0_5, %c0_6] : memref<8x16xf32, #tpu.memory_space<vmem>>, vector<8x16xf32>
    tpu.vector_store %arg4[%c0_5, %c0_6], %5 {strides = array<i32>} : memref<8x16xf32, #tpu.memory_space<vmem>>, vector<8x16xf32>,
    return
  }
  func.func @transform_0(%arg0: i32) -> (i32, i32) {
    %c0_i32 = arith.constant 0 : i32
    %c0_i32_0 = arith.constant 0 : i32
    return %arg0, %c0_i32 : i32, i32
  }
  func.func @transform_1(%arg0: i32) -> (i32, i32) {
    %c0_i32 = arith.constant 0 : i32
    %c0_i32_0 = arith.constant 0 : i32
    %c0_i32_1 = arith.constant 0 : i32
    return %c0_i32, %c0_i32_0 : i32, i32
  }
  func.func @transform_2(%arg0: i32) -> (i32, i32) {
    %c0_i32 = arith.constant 0 : i32
    %c0_i32_0 = arith.constant 0 : i32
    %c0_i32_1 = arith.constant 0 : i32
    return %c0_i32, %c0_i32_0 : i32, i32
  }
  func.func @transform_3(%arg0: i32) -> (i32, i32) {
    %c0_i32 = arith.constant 0 : i32
    %c0_i32_0 = arith.constant 0 : i32
    return %arg0, %c0_i32 : i32, i32
  }
}

</mosaic_0001>

<bundles_post_ra>
// kernel: fvc_transformer_forward.1
= control target key start
LH: loop header
LB: loop body
LE: loop exit
PB: predicated region body
PF: predicated region fallthrough
CT: control target
= control target key end

     0   :  { %v169_v3 = vmov 0.0|0.0   ;;  %vm170_vm0 = vmmov 0   ;;  %v171_v6 = vmov 0.0   ;;  %s223_s0 = inlined_call_operand.vmem [shape: f32[8,32], index: 0, kind: input, shape index: {}]   ;;  %s224_s1 = inlined_call_operand.vmem [shape: f32[32,16], index: 1, kind: input, shape index: {}]   ;;  %s225_s2 = inlined_call_operand.vmem [shape: f32[1,16], index: 2, kind: input, shape index: {}]   ;;  %s226_s3 = inlined_call_operand.hbm [shape: f32[8,16], index: 3, kind: output, shape index: {}]  }
   0x1   :  { %v16_v0 = vld [vmem:[%s224_s1] sm:$0xff]  ;;  %v17_v1 = vld [vmem:[%s224_s1 + $0x8] sm:$0xff]  ;;  %v18_v2 = vld [vmem:[%s224_s1 + $0x10] sm:$0xff]  ;;  %135 = vmatprep.subr.bf16.mxu0 %v169_v3  ;;  %132 = vmatprep.mubr.msk.f32.mxu0 %vm170_vm0, %v171_v6 }
   0x2   :  { %v136_v4 = vpack.c.bf16 %v17_v1, %v16_v0  ;;  %v19_v5 = vld [vmem:[%s224_s1 + $0x18] sm:$0xff] }
   0x3   :  { %8 = vsyncpa [#allocation3], 0  ;;  %v139_v7 = vpack.c.bf16 %v19_v5, %v18_v2  ;;  %v15_v8 = vld [vmem:[%s223_s0] sm:$0xff]  ;;  %vm27_vm1 = vcmask 261120   ;;  %s172_s24 = smov [#allocation2]   ;;  %vm101_vm2 = vcmask 130048  }
   0x4   :  { %137 = vmatpush3.bf16.msra.mxu0 %v136_v4  ;;  %v117_v9 = vld [vmem:[%s225_s2] ss:$0 sm:$0xff]  ;;  %s109_s1 = sshll.u32 %s172_s24, 4  ;;  %s110_s1 = int_to_ptr.vmem [resolvable:$true] %s109_s1 }
   0x5   :  { %138 = vmatprep.subr.bf16.mxu0 %v169_v3  ;;  %s145_s25 = scalar_lea.vmem %s110_s1, 128  ;;  %p150_p1 = scmp.lt.s32.totalorder %s110_s1, %s110_s1 }
   0x6   :  { %p146_p0 = scmp.ne.s32.totalorder %s110_s1, %s145_s25  ;;  %p151_p2 = scmp.lt.s32.totalorder %s145_s25, %s145_s25 }
   0x8   :  { %140 = vmatpush3.bf16.msra.mxu0 %v139_v7  ;;  %p152_p3 = por %p151_p2, %p150_p1 }
   0xa   :  { %p153_p4 = pnand %p152_p3, %p146_p0 }
   0xb   :  { %133 = vmatmul.mubr.msk.f32.vlgmr.msra.gmra.mrb[0].mxu0 %vm27_vm1, %v15_v8 }
  0xde   :  { %v97_v10 = vpop.f32.mrb[0].mxu0 }
  0xdf   :  { %v98_v11 = vadd.f32 %v117_v9, %v97_v10  ;;  %v134_v12 = vpop.f32.mrb[1].mxu0 }
  0xe1   :  { %102 = vst.msk [vmem:[#allocation2] sm:$0xff] %vm101_vm2, %v98_v11 }
  0xe2   :  { %156 = shalt.err (!%p153_p4)
}
  0xe3   :  { %s157_s27 = scalar_lea.hbm %s226_s3, 128 }
  0xe4   :  { %p158_p5 = scmp.ne.s32.totalorder %s226_s3, %s157_s27  ;;  %p161_p6 = scmp.lt.u32.totalorder %s157_s27, %s226_s3 }
  0xe6   :  { %p163_p7 = pnand %p161_p6, %p158_p5 }
  0xe8   :  { %166 = shalt.err (!%p163_p7)
}
  0xe9   :  { %112 = dma.vmem_to_hbm [thread:$0]  %s110_s1, 128, %s226_s3, [#allocation3]  }
  0xea   :  { %167 = dma.done.wait [#allocation3], 128  }
  0xeb   :  { %168 = vsyncadd [#allocation3], 4294967168 }
  0xec   :  { %116 = vsyncpa [#allocation3], 1 }

</bundles_post_ra>
